<compile_context>
chip_gen: v5e
topology: v5e:2x2
jax: 0.10.0
libtpu: 0.0.40
codegen_flags: <defaults>
</compile_context>

<pallas_src>
import math

import jax
import jax.numpy as jnp
from jax.experimental import pallas as pl
from jax.experimental.pallas import tpu as pltpu


def _pos_enc_kernel(x_ref, pe_ref, o_ref):
    # x_ref: (B, TR, L)   pe_ref: (TR, L)   o_ref: (B, TR, L)
    # TODO(synk): dropout on (x + pe) is identity (eval mode); training-mode parity
    # would need in-kernel pltpu.prng_seed / pltpu.prng_random_bits.
    o_ref[...] = (x_ref[...] + pe_ref[...][None, :, :]).astype(o_ref.dtype)


def make_positional_encoding_table(d_model, max_len=5000, dtype=jnp.float32):
    """Replicates the PyTorch buffer `pe` of shape (max_len, d_model)."""
    position = jnp.arange(max_len, dtype=jnp.float32)[:, None]                    # (L, 1)
    div_term = jnp.exp(
        jnp.arange(0, d_model, 2, dtype=jnp.float32) * -(math.log(10000.0) / d_model)
    )                                                                             # (D/2,)
    angles = position * div_term                                                  # (L, D/2)
    pe = jnp.zeros((max_len, d_model), dtype=dtype)
    pe = pe.at[:, 0::2].set(jnp.sin(angles).astype(dtype))
    pe = pe.at[:, 1::2].set(jnp.cos(angles).astype(dtype))
    return pe


_SUBLANE_BY_ITEMSIZE = {1: 32, 2: 16, 4: 8, 8: 8}


def _vmem_budgets():
    """(total_resident_budget_bytes, vmem_limit_bytes) per TPU generation."""
    try:
        cap = int(pltpu.get_tpu_info().vmem_capacity_bytes)
    except Exception:
        cap = 64 << 20                      # assume the smallest (v7x-sized) VMEM
    if cap <= (64 << 20):                   # v7x: 64 MiB physical -> stay well under
        return 24 << 20, 48 << 20
    return 40 << 20, 64 << 20               # v5e / v6e: 128 MiB physical, bigger tiles


def _choose_row_tile(R, B, L, itemsize, sublane, budget_bytes):
    """Rows per grid step.  Counts all three streams (x, pe, out), the 2x
    double-buffer factor, and keeps TR a sublane multiple (L is already a lane
    multiple), so the estimate matches the real resident VMEM footprint."""
    if R <= sublane:
        return R                            # single full-extent block (tiny problem)
    per_row = 2 * (2 * B + 1) * L * itemsize
    tr = max(1, budget_bytes // per_row)
    if R >= 4 * sublane:
        # >= 4 pipelined steps (>= 2 per v7x TensorCore) so prefetch of tile i+1
        # overlaps compute / writeback of tile i.
        tr = min(tr, max(sublane, R // 4))
    return max(sublane, (min(tr, R) // sublane) * sublane)


def positional_encoding(x, pe, *, interpret=False):
    """x: (B, S, D); pe: (max_len, D) buffer with max_len >= S.
    Returns x + pe[:S] broadcast over batch (dropout = identity, eval mode)."""
    B, S, D = x.shape
    itemsize = jnp.dtype(x.dtype).itemsize
    sublane = _SUBLANE_BY_ITEMSIZE.get(itemsize, 8)
    budget_bytes, vmem_limit = _vmem_budgets()

    folded = not (D % 128 == 0 and S >= sublane)
    if not folded:
        # Lane- and sublane-dense 3-D tiling; pe indexed in place (no slice copy).
        xv, pev, L, R, pad_cols = x, pe, D, S, 0
    else:
        # Fold the per-batch (S, D) plane into a lane-dense (R, 128) slab.
        C = S * D
        L = 128
        C_pad = -(-C // L) * L
        pad_cols = C_pad - C
        R = C_pad // L
        x2 = x.reshape(B, C)
        pe2 = pe[:S].reshape(1, C)          # small pe slab; x traffic dominates
        if pad_cols:
            # TODO(synk): rare fallback (S*D % 128 != 0) copies x once to pad; a fully
            # copy-free path would need masked lane stores instead.
            x2 = jnp.pad(x2, ((0, 0), (0, pad_cols)))
            pe2 = jnp.pad(pe2, ((0, 0), (0, pad_cols)))
        xv = x2.reshape(B, R, L)
        pev = pe2.reshape(R, L)

    tr = _choose_row_tile(R, B, L, itemsize, sublane, budget_bytes)
    grid = (pl.cdiv(R, tr),)                # masked edge block if tr does not divide R

    out = pl.pallas_call(
        _pos_enc_kernel,
        out_shape=jax.ShapeDtypeStruct((B, R, L), x.dtype),
        grid=grid,
        in_specs=[
            pl.BlockSpec((B, tr, L), lambda r: (0, r, 0)),   # x: whole batch per step
            pl.BlockSpec((tr, L), lambda r: (r, 0)),          # pe: one row tile, bcast in-kernel
        ],
        out_specs=pl.BlockSpec((B, tr, L), lambda r: (0, r, 0)),
        compiler_params=pltpu.CompilerParams(
            dimension_semantics=("parallel",),
            vmem_limit_bytes=vmem_limit,
        ),
        interpret=interpret,
    )(xv, pev)

    if folded:
        out = out.reshape(B, R * L)
        if pad_cols:
            out = out[:, : S * D]
        out = out.reshape(B, S, D)
    return out


if __name__ == "__main__":
    # Case 1: small shapes matching the module (exercises the folded lane-dense path).
    B, S, D = 2, 8, 32
    key = jax.random.PRNGKey(0)
    x = jax.random.normal(key, (B, S, D), dtype=jnp.float32)
    pe = make_positional_encoding_table(D, max_len=5000, dtype=jnp.float32)

    out = jax.block_until_ready(positional_encoding(x, pe))
    ref = x + pe[:S][None, :, :]
    assert out.shape == (B, S, D)
    assert jnp.allclose(out, ref, atol=1e-5, rtol=1e-5), "folded-path mismatch vs reference"

    # Case 2: d_model a multiple of 128 (exercises the direct 3-D path, pe indexed in place).
    B2, S2, D2 = 2, 16, 128
    x2 = jax.random.normal(jax.random.PRNGKey(0), (B2, S2, D2), dtype=jnp.float32)
    pe2 = make_positional_encoding_table(D2, max_len=64, dtype=jnp.float32)

    out2 = jax.block_until_ready(positional_encoding(x2, pe2))
    ref2 = x2 + pe2[:S2][None, :, :]
    assert out2.shape == (B2, S2, D2)
    assert jnp.allclose(out2, ref2, atol=1e-5, rtol=1e-5), "direct-path mismatch vs reference"

    print("KERNEL_OK")
</pallas_src>

<mosaic_0001>
module attributes {stable_mosaic.version = 11 : i64} {
  func.func @_pos_enc_kernel(%arg0: i32, %arg1: memref<2x2x128xf32, #tpu.memory_space<vmem>>, %arg2: memref<2x128xf32, #tpu.memory_space<vmem>>, %arg3: memref<2x2x128xf32, #tpu.memory_space<vmem>>) attributes {dimension_semantics = [#tpu.dimension_semantics<parallel>], iteration_bounds = array<i64: 1>, scalar_prefetch = 0 : i64, scratch_operands = 0 : i64, tpu.core_type = #tpu.core_type<tc>, window_params = [{transform_indices = @transform_0, window_bounds = array<i64: 2, 2, 128>}, {transform_indices = @transform_1, window_bounds = array<i64: 2, 128>}, {transform_indices = @transform_2, window_bounds = array<i64: 2, 2, 128>}]} {
    %c0 = arith.constant 0 : index
    %c0_0 = arith.constant 0 : index
    %c0_1 = arith.constant 0 : index
    %0 = vector.load %arg1[%c0, %c0_0, %c0_1] : memref<2x2x128xf32, #tpu.memory_space<vmem>>, vector<2x2x128xf32>
    %c0_2 = arith.constant 0 : index
    %c0_3 = arith.constant 0 : index
    %1 = vector.load %arg2[%c0_2, %c0_3] : memref<2x128xf32, #tpu.memory_space<vmem>>, vector<2x128xf32>
    %2 = vector.shape_cast %1 : vector<2x128xf32> to vector<1x2x128xf32>
    %3 = vector.broadcast %2 : vector<1x2x128xf32> to vector<2x2x128xf32>
    %4 = arith.addf %0, %3 : vector<2x2x128xf32>
    %c0_4 = arith.constant 0 : index
    %c0_5 = arith.constant 0 : index
    %c0_6 = arith.constant 0 : index
    %5 = vector.load %arg3[%c0_4, %c0_5, %c0_6] : memref<2x2x128xf32, #tpu.memory_space<vmem>>, vector<2x2x128xf32>
    tpu.vector_store %arg3[%c0_4, %c0_5, %c0_6], %4 {strides = array<i32>} : memref<2x2x128xf32, #tpu.memory_space<vmem>>, vector<2x2x128xf32>,
    return
  }
  func.func @transform_0(%arg0: i32) -> (i32, i32, i32) {
    %c0_i32 = arith.constant 0 : i32
    %c0_i32_0 = arith.constant 0 : i32
    %c0_i32_1 = arith.constant 0 : i32
    return %c0_i32, %arg0, %c0_i32_0 : i32, i32, i32
  }
  func.func @transform_1(%arg0: i32) -> (i32, i32) {
    %c0_i32 = arith.constant 0 : i32
    %c0_i32_0 = arith.constant 0 : i32
    return %arg0, %c0_i32 : i32, i32
  }
  func.func @transform_2(%arg0: i32) -> (i32, i32, i32) {
    %c0_i32 = arith.constant 0 : i32
    %c0_i32_0 = arith.constant 0 : i32
    %c0_i32_1 = arith.constant 0 : i32
    return %c0_i32, %arg0, %c0_i32_0 : i32, i32, i32
  }
}

</mosaic_0001>

<bundles_post_ra>
// kernel: tpu_custom_call.1
= control target key start
LH: loop header
LB: loop body
LE: loop exit
PB: predicated region body
PF: predicated region fallthrough
CT: control target
= control target key end

     0   :  { %7 = vsyncpa [#allocation3], 0  ;;  %s181_s0 = inlined_call_operand.hbm [shape: f32[2,2,128], index: 0, kind: input, shape index: {}]   ;;  %s182_s1 = inlined_call_operand.hbm [shape: f32[2,128], index: 1, kind: input, shape index: {}]   ;;  %s183_s2 = inlined_call_operand.hbm [shape: f32[2,2,128], index: 2, kind: output, shape index: {}]  }
   0x1   :  { %8 = vsyncpa [#allocation6], 0 }
   0x2   :  { %9 = vsyncpa [#allocation4], 0  ;;  %s14_s11 = sshll.u32 %s181_s0, 4  ;;  %s152_s12 = smov [#allocation2]   ;;  %s15_s11 = int_to_ptr.hbm [resolvable:$true] %s14_s11 }
   0x3   :  { %s16_s13 = sshll.u32 %s152_s12, 4  ;;  %s28_s16 = sshll.u32 %s182_s1, 4  ;;  %s17_s13 = int_to_ptr.vmem [resolvable:$true] %s16_s13  ;;  %s29_s16 = int_to_ptr.hbm [resolvable:$true] %s28_s16 }
   0x4   :  { %s153_s17 = smov 32   ;;  %s154_s18 = smov 2  }
   0x5   :  { %22 = dma.hbm_to_vmem [thread:$0]  %s15_s11, 64, %s17_s13, [#allocation3], %s153_s17, %s153_s17, %s154_s18  }
   0x6   :  { %s155_s19 = smov [#allocation5]  }
   0x7   :  { %s30_s20 = sshll.u32 %s155_s19, 4  ;;  %s31_s20 = int_to_ptr.vmem [resolvable:$true] %s30_s20 }
   0x8   :  { %33 = dma.hbm_to_vmem [thread:$0]  %s29_s16, 32, %s31_s20, [#allocation6]  }
   0x9   :  { %146 = dma.done.wait [#allocation3], 64  }
   0xa   :  { %147 = vsyncadd [#allocation3], 4294967232 }
   0xb   :  { %148 = dma.done.wait [#allocation6], 32  }
   0xc   :  { %149 = vsyncadd [#allocation6], 4294967264  ;;  %s156_s0 = smov [#allocation7]   ;;  %s55_s24 = sshll.u32 %s183_s2, 4  ;;  %v42_v0 = vld [vmem:[#allocation2] sm:$0x3]  ;;  %s56_s24 = int_to_ptr.hbm [resolvable:$true] %s55_s24 }
   0xd   :  { %s53_s21 = sshll.u32 %s156_s0, 4  ;;  %v44_v1 = vld [vmem:[#allocation5] sm:$0x3]  ;;  %v43_v2 = vld [vmem:[#allocation2 + $0x2] sm:$0x3]  ;;  %s54_s21 = int_to_ptr.vmem [resolvable:$true] %s53_s21 }
   0xe   :  { %v45_v3 = vadd.f32 %v44_v1, %v42_v0  ;;  %v46_v4 = vadd.f32 %v44_v1, %v43_v2 }
  0x10   :  { %47 = vst [vmem:[#allocation7] sm:$0x3] %v45_v3 }
  0x11   :  { %48 = vst [vmem:[#allocation7 + $0x2] sm:$0x3] %v46_v4 }
  0x12   :  { %61 = dma.vmem_to_hbm [thread:$0]  %s54_s21, 64, %s56_s24, [#allocation4], %s153_s17, %s153_s17, %s154_s18  }
  0x13   :  { %150 = dma.done.wait [#allocation4], 64  }
  0x14   :  { %151 = vsyncadd [#allocation4], 4294967232 }
  0x15   :  { %66 = vsyncpa [#allocation3], 1 }
  0x16   :  { %67 = vsyncpa [#allocation6], 1 }
  0x17   :  { %68 = vsyncpa [#allocation4], 1 }

</bundles_post_ra>
